<compile_context>
chip_gen: v7x
topology: tpu7x:2x2x1
jax: 0.10.0
libtpu: 0.0.40
codegen_flags: <defaults>
</compile_context>

<pallas_src>
import math

import jax
import jax.numpy as jnp
import numpy as np
from jax.experimental import pallas as pl
from jax.experimental.pallas import tpu as pltpu

_PI = 3.141592653589793
_HIDDEN = 16
_SUBLANES = 8
_LANES = 128
_MIN_BLOCK = _SUBLANES * _LANES  # 1024 rows: one dense (8,128) tile per vreg


def _atan_poly(z):
  """Minimax polynomial approximation of atan(z) for |z| <= 1 (~1e-5 abs err)."""
  z2 = z * z
  p = jnp.float32(-0.01172120)
  p = p * z2 + jnp.float32(0.05265332)
  p = p * z2 + jnp.float32(-0.11643287)
  p = p * z2 + jnp.float32(0.19354346)
  p = p * z2 + jnp.float32(-0.33262347)
  p = p * z2 + jnp.float32(0.99997726)
  return z * p


def _atan2(y, x):
  """atan2 from abs/where/mul/add + approx reciprocal (all VPU/EUP lowerable).

  Matches math.atan2 quadrant conventions for nonzero inputs; atan2(0, 0) -> 0
  and signed-zero / negative-x-axis edge cases are not distinguished (fine for
  the 1e-3 test tolerance; documented behavioral difference).
  """
  abs_y = jnp.abs(y)
  abs_x = jnp.abs(x)
  swap = abs_y > abs_x
  num = jnp.where(swap, abs_x, abs_y)
  den = jnp.where(swap, abs_y, abs_x)
  den_zero = den == 0.0
  safe_den = jnp.where(den_zero, 1.0, den)
  # Approximate reciprocal rides the otherwise-idle EUP slot.
  t = num * pl.reciprocal(safe_den, approx=True)
  ang = _atan_poly(t)
  ang = jnp.where(swap, jnp.float32(_PI / 2) - ang, ang)
  ang = jnp.where(den_zero, 0.0, ang)
  ang = jnp.where(x < 0.0, jnp.float32(_PI) - ang, ang)
  ang = jnp.where(y < 0.0, -ang, ang)
  return ang


def polarnet_kernel(x_ref, w1_ref, b1_ref, w2_ref, b2_ref, out_ref):
  # x_ref: (2, 8, L) VMEM block -- batch packed dense over sublanes x lanes.
  x0 = x_ref[0]                           # (8, L)
  x1 = x_ref[1]                           # (8, L)

  # cartesian -> polar (the per-row python loop in the torch module),
  # on fully dense (8, L) tiles.
  r = jnp.sqrt(x0 * x0 + x1 * x1)         # (8, L)
  a = _atan2(x1, x0)                      # (8, L)

  # Fused layer1 + tanh + layer2: unrolled scalar-weight accumulation.
  # Weights are SMEM scalars; no (16, block) intermediates are materialized.
  z = jnp.zeros_like(r)
  for k in range(_HIDDEN):
    pre = w1_ref[0, k] * r + w1_ref[1, k] * a + b1_ref[k]
    z = z + w2_ref[k] * jnp.tanh(pre)
  z = z + b2_ref[0]

  out_ref[...] = jax.nn.sigmoid(z).astype(out_ref.dtype)


def _round_up(n, m):
  return ((n + m - 1) // m) * m


def polarnet_forward(x, w1, b1, w2, b2, *, block_n=8192):
  """x: (N, 2) f32.  w1: (2,16), b1: (1,16), w2: (16,1), b2: (1,1).

  Returns (N, 1) f32 = sigmoid(layer2(tanh(layer1([r, a])))).
  """
  n = x.shape[0]

  # Rows per grid step: multiple of 8*128=1024 (dense sublane x lane tile).
  block = min(int(block_n), _round_up(n, _MIN_BLOCK))
  if n > _MIN_BLOCK:
    # Keep >= 2 grid steps so v7x's two TensorCores both get work.
    block = min(block, _round_up(-(-n // 2), _MIN_BLOCK))
  block = max(_MIN_BLOCK, _round_up(block, _MIN_BLOCK))
  n_pad = _round_up(n, block)
  grid_len = n_pad // block
  lanes = block // _SUBLANES

  # Transpose once in the wrapper, pad tail rows with zeros (atan2(0,0) -> 0
  # in the kernel; padded outputs are sliced off below), then fold the batch
  # onto (sublane, lane): row i -> (i // lanes, i % lanes).
  xt = jnp.transpose(x).astype(jnp.float32)             # (2, N)
  if n_pad != n:
    xt = jnp.pad(xt, ((0, 0), (0, n_pad - n)))
  xt = xt.reshape(2, grid_len * _SUBLANES, lanes)        # (2, 8*G, L)

  # All parameters ride in SMEM and are read as scalars in the fused loop.
  w1s = jnp.asarray(w1, jnp.float32)                     # (2, 16)
  b1s = jnp.asarray(b1, jnp.float32).reshape(_HIDDEN)    # (16,)
  w2s = jnp.asarray(w2, jnp.float32).reshape(_HIDDEN)    # (16,)
  b2s = jnp.asarray(b2, jnp.float32).reshape(1)          # (1,)

  out = pl.pallas_call(
      polarnet_kernel,
      out_shape=jax.ShapeDtypeStruct((grid_len * _SUBLANES, lanes),
                                     jnp.float32),
      grid=(grid_len,),
      in_specs=[
          pl.BlockSpec((2, _SUBLANES, lanes), lambda i: (0, i, 0)),
          pl.BlockSpec(memory_space=pltpu.MemorySpace.SMEM),   # w1 (2,16)
          pl.BlockSpec(memory_space=pltpu.MemorySpace.SMEM),   # b1 (16,)
          pl.BlockSpec(memory_space=pltpu.MemorySpace.SMEM),   # w2 (16,)
          pl.BlockSpec(memory_space=pltpu.MemorySpace.SMEM),   # b2 (1,)
      ],
      out_specs=pl.BlockSpec((_SUBLANES, lanes), lambda i: (i, 0)),
      compiler_params=pltpu.CompilerParams(
          dimension_semantics=("parallel",)),
  )(xt, w1s, b1s, w2s, b2s)

  # Dense (8*G, L) slab -> flat batch order -> (N, 1) like the torch module.
  return out.reshape(-1)[:n].reshape(n, 1)


def _reference(x, w1, b1, w2, b2):
  r = jnp.sqrt(x[:, 0] ** 2 + x[:, 1] ** 2)
  a = jnp.arctan2(x[:, 1], x[:, 0])
  feat = jnp.stack([r, a], axis=-1)                 # (N, 2)
  h = jnp.tanh(feat @ w1 + b1)                      # (N, 16)
  z = h @ w2 + b2                                   # (N, 1)
  return jax.nn.sigmoid(z)


if __name__ == "__main__":
  key = jax.random.PRNGKey(0)
  kx, k1, k2, k3, k4, kx2 = jax.random.split(key, 6)

  # Deterministic init mimicking torch.nn.Linear defaults (U[-1/sqrt(fan_in)]).
  bound1 = 1.0 / math.sqrt(2.0)
  bound2 = 1.0 / math.sqrt(16.0)
  w1 = jax.random.uniform(k1, (2, 16), jnp.float32, -bound1, bound1)
  b1 = jax.random.uniform(k2, (1, 16), jnp.float32, -bound1, bound1)
  w2 = jax.random.uniform(k3, (16, 1), jnp.float32, -bound2, bound2)
  b2 = jax.random.uniform(k4, (1, 1), jnp.float32, -bound2, bound2)

  # Small, non-multiple-of-1024 batch: exercises padding + single-step grid.
  N = 300
  x = jax.random.normal(kx, (N, 2), dtype=jnp.float32)
  out_small = jax.block_until_ready(polarnet_forward(x, w1, b1, w2, b2))
  ref_small = _reference(x, w1, b1, w2, b2)
  np.testing.assert_allclose(np.asarray(out_small), np.asarray(ref_small),
                             rtol=1e-3, atol=1e-3)

  # Larger batch: multi-step grid (block_n=1024 -> 3 steps) and the default
  # path (auto-split into 2 steps for megacore).
  N2 = 2500
  x2 = jax.random.normal(kx2, (N2, 2), dtype=jnp.float32)
  ref_big = _reference(x2, w1, b1, w2, b2)
  out_multi = jax.block_until_ready(
      polarnet_forward(x2, w1, b1, w2, b2, block_n=1024))
  out_default = jax.block_until_ready(
      polarnet_forward(x2, w1, b1, w2, b2))
  np.testing.assert_allclose(np.asarray(out_multi), np.asarray(ref_big),
                             rtol=1e-3, atol=1e-3)
  np.testing.assert_allclose(np.asarray(out_default), np.asarray(ref_big),
                             rtol=1e-3, atol=1e-3)

  print("KERNEL_OK")
</pallas_src>

<mosaic_0001>
module attributes {stable_mosaic.version = 11 : i64} {
  func.func @polarnet_kernel(%arg0: i32, %arg1: memref<2x8x128xf32, #tpu.memory_space<vmem>>, %arg2: memref<2x16xf32, #tpu.memory_space<smem>>, %arg3: memref<16xf32, #tpu.memory_space<smem>>, %arg4: memref<16xf32, #tpu.memory_space<smem>>, %arg5: memref<1xf32, #tpu.memory_space<smem>>, %arg6: memref<8x128xf32, #tpu.memory_space<vmem>>) attributes {dimension_semantics = [#tpu.dimension_semantics<parallel>], iteration_bounds = array<i64: 1>, scalar_prefetch = 0 : i64, scratch_operands = 0 : i64, tpu.core_type = #tpu.core_type<tc>, window_params = [{transform_indices = @transform_0, window_bounds = array<i64: 2, 8, 128>}, {transform_indices = @transform_1, window_bounds = array<i64: 2, 16>}, {transform_indices = @transform_2, window_bounds = array<i64: 16>}, {transform_indices = @transform_3, window_bounds = array<i64: 16>}, {transform_indices = @transform_4, window_bounds = array<i64: 1>}, {transform_indices = @transform_5, window_bounds = array<i64: 8, 128>}]} {
    %c0 = arith.constant 0 : index
    %c0_0 = arith.constant 0 : index
    %c0_1 = arith.constant 0 : index
    %0 = vector.load %arg1[%c0, %c0_0, %c0_1] : memref<2x8x128xf32, #tpu.memory_space<vmem>>, vector<1x8x128xf32>
    %1 = vector.shape_cast %0 : vector<1x8x128xf32> to vector<8x128xf32>
    %c1 = arith.constant 1 : index
    %c0_2 = arith.constant 0 : index
    %c0_3 = arith.constant 0 : index
    %2 = vector.load %arg1[%c1, %c0_2, %c0_3] : memref<2x8x128xf32, #tpu.memory_space<vmem>>, vector<1x8x128xf32>
    %3 = vector.shape_cast %2 : vector<1x8x128xf32> to vector<8x128xf32>
    %4 = arith.mulf %1, %1 : vector<8x128xf32>
    %5 = arith.mulf %3, %3 : vector<8x128xf32>
    %6 = arith.addf %4, %5 : vector<8x128xf32>
    %7 = math.sqrt %6 : vector<8x128xf32>
    %8 = math.absf %3 : vector<8x128xf32>
    %9 = math.absf %1 : vector<8x128xf32>
    %10 = arith.cmpf ogt, %8, %9 : vector<8x128xf32>
    %11 = arith.select %10, %9, %8 : vector<8x128xi1>, vector<8x128xf32>
    %12 = arith.select %10, %8, %9 : vector<8x128xi1>, vector<8x128xf32>
    %cst = arith.constant 0.000000e+00 : f32
    %13 = vector.broadcast %cst : f32 to vector<8x128xf32>
    %14 = arith.cmpf oeq, %12, %13 : vector<8x128xf32>
    %cst_4 = arith.constant 1.000000e+00 : f32
    %15 = vector.broadcast %cst_4 : f32 to vector<8x128xf32>
    %16 = arith.select %14, %15, %12 : vector<8x128xi1>, vector<8x128xf32>
    %17 = tpu.reciprocal %16 {approx = true} : vector<8x128xf32> -> vector<8x128xf32>
    %18 = arith.mulf %11, %17 : vector<8x128xf32>
    %19 = arith.mulf %18, %18 : vector<8x128xf32>
    %cst_5 = arith.constant -1.172120e-02 : f32
    %20 = vector.broadcast %cst_5 : f32 to vector<8x128xf32>
    %21 = arith.mulf %20, %19 : vector<8x128xf32>
    %cst_6 = arith.constant 0.0526533201 : f32
    %22 = vector.broadcast %cst_6 : f32 to vector<8x128xf32>
    %23 = arith.addf %21, %22 : vector<8x128xf32>
    %24 = arith.mulf %23, %19 : vector<8x128xf32>
    %cst_7 = arith.constant -0.116432868 : f32
    %25 = vector.broadcast %cst_7 : f32 to vector<8x128xf32>
    %26 = arith.addf %24, %25 : vector<8x128xf32>
    %27 = arith.mulf %26, %19 : vector<8x128xf32>
    %cst_8 = arith.constant 0.193543464 : f32
    %28 = vector.broadcast %cst_8 : f32 to vector<8x128xf32>
    %29 = arith.addf %27, %28 : vector<8x128xf32>
    %30 = arith.mulf %29, %19 : vector<8x128xf32>
    %cst_9 = arith.constant -0.332623482 : f32
    %31 = vector.broadcast %cst_9 : f32 to vector<8x128xf32>
    %32 = arith.addf %30, %31 : vector<8x128xf32>
    %33 = arith.mulf %32, %19 : vector<8x128xf32>
    %cst_10 = arith.constant 0.999977231 : f32
    %34 = vector.broadcast %cst_10 : f32 to vector<8x128xf32>
    %35 = arith.addf %33, %34 : vector<8x128xf32>
    %36 = arith.mulf %18, %35 : vector<8x128xf32>
    %cst_11 = arith.constant 1.57079637 : f32
    %37 = vector.broadcast %cst_11 : f32 to vector<8x128xf32>
    %38 = arith.subf %37, %36 : vector<8x128xf32>
    %39 = arith.select %10, %38, %36 : vector<8x128xi1>, vector<8x128xf32>
    %cst_12 = arith.constant 0.000000e+00 : f32
    %40 = vector.broadcast %cst_12 : f32 to vector<8x128xf32>
    %41 = arith.select %14, %40, %39 : vector<8x128xi1>, vector<8x128xf32>
    %cst_13 = arith.constant 0.000000e+00 : f32
    %42 = vector.broadcast %cst_13 : f32 to vector<8x128xf32>
    %43 = arith.cmpf olt, %1, %42 : vector<8x128xf32>
    %cst_14 = arith.constant 3.14159274 : f32
    %44 = vector.broadcast %cst_14 : f32 to vector<8x128xf32>
    %45 = arith.subf %44, %41 : vector<8x128xf32>
    %46 = arith.select %43, %45, %41 : vector<8x128xi1>, vector<8x128xf32>
    %cst_15 = arith.constant 0.000000e+00 : f32
    %47 = vector.broadcast %cst_15 : f32 to vector<8x128xf32>
    %48 = arith.cmpf olt, %3, %47 : vector<8x128xf32>
    %cst_16 = arith.constant 0.000000e+00 : f32
    %49 = vector.broadcast %cst_16 : f32 to vector<8x128xf32>
    %50 = arith.subf %49, %46 : vector<8x128xf32>
    %51 = arith.select %48, %50, %46 : vector<8x128xi1>, vector<8x128xf32>
    %cst_17 = arith.constant 0.000000e+00 : f32
    %52 = vector.broadcast %cst_17 : f32 to vector<8x128xf32>
    %c0_18 = arith.constant 0 : index
    %c0_19 = arith.constant 0 : index
    %53 = memref.load %arg2[%c0_18, %c0_19] : memref<2x16xf32, #tpu.memory_space<smem>>
    %54 = vector.broadcast %53 : f32 to vector<8x128xf32>
    %55 = arith.mulf %54, %7 : vector<8x128xf32>
    %c1_20 = arith.constant 1 : index
    %c0_21 = arith.constant 0 : index
    %56 = memref.load %arg2[%c1_20, %c0_21] : memref<2x16xf32, #tpu.memory_space<smem>>
    %57 = vector.broadcast %56 : f32 to vector<8x128xf32>
    %58 = arith.mulf %57, %51 : vector<8x128xf32>
    %59 = arith.addf %55, %58 : vector<8x128xf32>
    %c0_22 = arith.constant 0 : index
    %60 = memref.load %arg3[%c0_22] : memref<16xf32, #tpu.memory_space<smem>>
    %61 = vector.broadcast %60 : f32 to vector<8x128xf32>
    %62 = arith.addf %59, %61 : vector<8x128xf32>
    %c0_23 = arith.constant 0 : index
    %63 = memref.load %arg4[%c0_23] : memref<16xf32, #tpu.memory_space<smem>>
    %64 = math.tanh %62 : vector<8x128xf32>
    %65 = vector.broadcast %63 : f32 to vector<8x128xf32>
    %66 = arith.mulf %65, %64 : vector<8x128xf32>
    %67 = arith.addf %52, %66 : vector<8x128xf32>
    %c0_24 = arith.constant 0 : index
    %c1_25 = arith.constant 1 : index
    %68 = memref.load %arg2[%c0_24, %c1_25] : memref<2x16xf32, #tpu.memory_space<smem>>
    %69 = vector.broadcast %68 : f32 to vector<8x128xf32>
    %70 = arith.mulf %69, %7 : vector<8x128xf32>
    %c1_26 = arith.constant 1 : index
    %c1_27 = arith.constant 1 : index
    %71 = memref.load %arg2[%c1_26, %c1_27] : memref<2x16xf32, #tpu.memory_space<smem>>
    %72 = vector.broadcast %71 : f32 to vector<8x128xf32>
    %73 = arith.mulf %72, %51 : vector<8x128xf32>
    %74 = arith.addf %70, %73 : vector<8x128xf32>
    %c1_28 = arith.constant 1 : index
    %75 = memref.load %arg3[%c1_28] : memref<16xf32, #tpu.memory_space<smem>>
    %76 = vector.broadcast %75 : f32 to vector<8x128xf32>
    %77 = arith.addf %74, %76 : vector<8x128xf32>
    %c1_29 = arith.constant 1 : index
    %78 = memref.load %arg4[%c1_29] : memref<16xf32, #tpu.memory_space<smem>>
    %79 = math.tanh %77 : vector<8x128xf32>
    %80 = vector.broadcast %78 : f32 to vector<8x128xf32>
    %81 = arith.mulf %80, %79 : vector<8x128xf32>
    %82 = arith.addf %67, %81 : vector<8x128xf32>
    %c0_30 = arith.constant 0 : index
    %c2 = arith.constant 2 : index
    %83 = memref.load %arg2[%c0_30, %c2] : memref<2x16xf32, #tpu.memory_space<smem>>
    %84 = vector.broadcast %83 : f32 to vector<8x128xf32>
    %85 = arith.mulf %84, %7 : vector<8x128xf32>
    %c1_31 = arith.constant 1 : index
    %c2_32 = arith.constant 2 : index
    %86 = memref.load %arg2[%c1_31, %c2_32] : memref<2x16xf32, #tpu.memory_space<smem>>
    %87 = vector.broadcast %86 : f32 to vector<8x128xf32>
    %88 = arith.mulf %87, %51 : vector<8x128xf32>
    %89 = arith.addf %85, %88 : vector<8x128xf32>
    %c2_33 = arith.constant 2 : index
    %90 = memref.load %arg3[%c2_33] : memref<16xf32, #tpu.memory_space<smem>>
    %91 = vector.broadcast %90 : f32 to vector<8x128xf32>
    %92 = arith.addf %89, %91 : vector<8x128xf32>
    %c2_34 = arith.constant 2 : index
    %93 = memref.load %arg4[%c2_34] : memref<16xf32, #tpu.memory_space<smem>>
    %94 = math.tanh %92 : vector<8x128xf32>
    %95 = vector.broadcast %93 : f32 to vector<8x128xf32>
    %96 = arith.mulf %95, %94 : vector<8x128xf32>
    %97 = arith.addf %82, %96 : vector<8x128xf32>
    %c0_35 = arith.constant 0 : index
    %c3 = arith.constant 3 : index
    %98 = memref.load %arg2[%c0_35, %c3] : memref<2x16xf32, #tpu.memory_space<smem>>
    %99 = vector.broadcast %98 : f32 to vector<8x128xf32>
    %100 = arith.mulf %99, %7 : vector<8x128xf32>
    %c1_36 = arith.constant 1 : index
    %c3_37 = arith.constant 3 : index
    %101 = memref.load %arg2[%c1_36, %c3_37] : memref<2x16xf32, #tpu.memory_space<smem>>
    %102 = vector.broadcast %101 : f32 to vector<8x128xf32>
    %103 = arith.mulf %102, %51 : vector<8x128xf32>
    %104 = arith.addf %100, %103 : vector<8x128xf32>
    %c3_38 = arith.constant 3 : index
    %105 = memref.load %arg3[%c3_38] : memref<16xf32, #tpu.memory_space<smem>>
    %106 = vector.broadcast %105 : f32 to vector<8x128xf32>
    %107 = arith.addf %104, %106 : vector<8x128xf32>
    %c3_39 = arith.constant 3 : index
    %108 = memref.load %arg4[%c3_39] : memref<16xf32, #tpu.memory_space<smem>>
    %109 = math.tanh %107 : vector<8x128xf32>
    %110 = vector.broadcast %108 : f32 to vector<8x128xf32>
    %111 = arith.mulf %110, %109 : vector<8x128xf32>
    %112 = arith.addf %97, %111 : vector<8x128xf32>
    %c0_40 = arith.constant 0 : index
    %c4 = arith.constant 4 : index
    %113 = memref.load %arg2[%c0_40, %c4] : memref<2x16xf32, #tpu.memory_space<smem>>
    %114 = vector.broadcast %113 : f32 to vector<8x128xf32>
    %115 = arith.mulf %114, %7 : vector<8x128xf32>
    %c1_41 = arith.constant 1 : index
    %c4_42 = arith.constant 4 : index
    %116 = memref.load %arg2[%c1_41, %c4_42] : memref<2x16xf32, #tpu.memory_space<smem>>
    %117 = vector.broadcast %116 : f32 to vector<8x128xf32>
    %118 = arith.mulf %117, %51 : vector<8x128xf32>
    %119 = arith.addf %115, %118 : vector<8x128xf32>
    %c4_43 = arith.constant 4 : index
    %120 = memref.load %arg3[%c4_43] : memref<16xf32, #tpu.memory_space<smem>>
    %121 = vector.broadcast %120 : f32 to vector<8x128xf32>
    %122 = arith.addf %119, %121 : vector<8x128xf32>
    %c4_44 = arith.constant 4 : index
    %123 = memref.load %arg4[%c4_44] : memref<16xf32, #tpu.memory_space<smem>>
    %124 = math.tanh %122 : vector<8x128xf32>
    %125 = vector.broadcast %123 : f32 to vector<8x128xf32>
    %126 = arith.mulf %125, %124 : vector<8x128xf32>
    %127 = arith.addf %112, %126 : vector<8x128xf32>
    %c0_45 = arith.constant 0 : index
    %c5 = arith.constant 5 : index
    %128 = memref.load %arg2[%c0_45, %c5] : memref<2x16xf32, #tpu.memory_space<smem>>
    %129 = vector.broadcast %128 : f32 to vector<8x128xf32>
    %130 = arith.mulf %129, %7 : vector<8x128xf32>
    %c1_46 = arith.constant 1 : index
    %c5_47 = arith.constant 5 : index
    %131 = memref.load %arg2[%c1_46, %c5_47] : memref<2x16xf32, #tpu.memory_space<smem>>
    %132 = vector.broadcast %131 : f32 to vector<8x128xf32>
    %133 = arith.mulf %132, %51 : vector<8x128xf32>
    %134 = arith.addf %130, %133 : vector<8x128xf32>
    %c5_48 = arith.constant 5 : index
    %135 = memref.load %arg3[%c5_48] : memref<16xf32, #tpu.memory_space<smem>>
    %136 = vector.broadcast %135 : f32 to vector<8x128xf32>
    %137 = arith.addf %134, %136 : vector<8x128xf32>
    %c5_49 = arith.constant 5 : index
    %138 = memref.load %arg4[%c5_49] : memref<16xf32, #tpu.memory_space<smem>>
    %139 = math.tanh %137 : vector<8x128xf32>
    %140 = vector.broadcast %138 : f32 to vector<8x128xf32>
    %141 = arith.mulf %140, %139 : vector<8x128xf32>
    %142 = arith.addf %127, %141 : vector<8x128xf32>
    %c0_50 = arith.constant 0 : index
    %c6 = arith.constant 6 : index
    %143 = memref.load %arg2[%c0_50, %c6] : memref<2x16xf32, #tpu.memory_space<smem>>
    %144 = vector.broadcast %143 : f32 to vector<8x128xf32>
    %145 = arith.mulf %144, %7 : vector<8x128xf32>
    %c1_51 = arith.constant 1 : index
    %c6_52 = arith.constant 6 : index
    %146 = memref.load %arg2[%c1_51, %c6_52] : memref<2x16xf32, #tpu.memory_space<smem>>
    %147 = vector.broadcast %146 : f32 to vector<8x128xf32>
    %148 = arith.mulf %147, %51 : vector<8x128xf32>
    %149 = arith.addf %145, %148 : vector<8x128xf32>
    %c6_53 = arith.constant 6 : index
    %150 = memref.load %arg3[%c6_53] : memref<16xf32, #tpu.memory_space<smem>>
    %151 = vector.broadcast %150 : f32 to vector<8x128xf32>
    %152 = arith.addf %149, %151 : vector<8x128xf32>
    %c6_54 = arith.constant 6 : index
    %153 = memref.load %arg4[%c6_54] : memref<16xf32, #tpu.memory_space<smem>>
    %154 = math.tanh %152 : vector<8x128xf32>
    %155 = vector.broadcast %153 : f32 to vector<8x128xf32>
    %156 = arith.mulf %155, %154 : vector<8x128xf32>
    %157 = arith.addf %142, %156 : vector<8x128xf32>
    %c0_55 = arith.constant 0 : index
    %c7 = arith.constant 7 : index
    %158 = memref.load %arg2[%c0_55, %c7] : memref<2x16xf32, #tpu.memory_space<smem>>
    %159 = vector.broadcast %158 : f32 to vector<8x128xf32>
    %160 = arith.mulf %159, %7 : vector<8x128xf32>
    %c1_56 = arith.constant 1 : index
    %c7_57 = arith.constant 7 : index
    %161 = memref.load %arg2[%c1_56, %c7_57] : memref<2x16xf32, #tpu.memory_space<smem>>
    %162 = vector.broadcast %161 : f32 to vector<8x128xf32>
    %163 = arith.mulf %162, %51 : vector<8x128xf32>
    %164 = arith.addf %160, %163 : vector<8x128xf32>
    %c7_58 = arith.constant 7 : index
    %165 = memref.load %arg3[%c7_58] : memref<16xf32, #tpu.memory_space<smem>>
    %166 = vector.broadcast %165 : f32 to vector<8x128xf32>
    %167 = arith.addf %164, %166 : vector<8x128xf32>
    %c7_59 = arith.constant 7 : index
    %168 = memref.load %arg4[%c7_59] : memref<16xf32, #tpu.memory_space<smem>>
    %169 = math.tanh %167 : vector<8x128xf32>
    %170 = vector.broadcast %168 : f32 to vector<8x128xf32>
    %171 = arith.mulf %170, %169 : vector<8x128xf32>
    %172 = arith.addf %157, %171 : vector<8x128xf32>
    %c0_60 = arith.constant 0 : index
    %c8 = arith.constant 8 : index
    %173 = memref.load %arg2[%c0_60, %c8] : memref<2x16xf32, #tpu.memory_space<smem>>
    %174 = vector.broadcast %173 : f32 to vector<8x128xf32>
    %175 = arith.mulf %174, %7 : vector<8x128xf32>
    %c1_61 = arith.constant 1 : index
    %c8_62 = arith.constant 8 : index
    %176 = memref.load %arg2[%c1_61, %c8_62] : memref<2x16xf32, #tpu.memory_space<smem>>
    %177 = vector.broadcast %176 : f32 to vector<8x128xf32>
    %178 = arith.mulf %177, %51 : vector<8x128xf32>
    %179 = arith.addf %175, %178 : vector<8x128xf32>
    %c8_63 = arith.constant 8 : index
    %180 = memref.load %arg3[%c8_63] : memref<16xf32, #tpu.memory_space<smem>>
    %181 = vector.broadcast %180 : f32 to vector<8x128xf32>
    %182 = arith.addf %179, %181 : vector<8x128xf32>
    %c8_64 = arith.constant 8 : index
    %183 = memref.load %arg4[%c8_64] : memref<16xf32, #tpu.memory_space<smem>>
    %184 = math.tanh %182 : vector<8x128xf32>
    %185 = vector.broadcast %183 : f32 to vector<8x128xf32>
    %186 = arith.mulf %185, %184 : vector<8x128xf32>
    %187 = arith.addf %172, %186 : vector<8x128xf32>
    %c0_65 = arith.constant 0 : index
    %c9 = arith.constant 9 : index
    %188 = memref.load %arg2[%c0_65, %c9] : memref<2x16xf32, #tpu.memory_space<smem>>
    %189 = vector.broadcast %188 : f32 to vector<8x128xf32>
    %190 = arith.mulf %189, %7 : vector<8x128xf32>
    %c1_66 = arith.constant 1 : index
    %c9_67 = arith.constant 9 : index
    %191 = memref.load %arg2[%c1_66, %c9_67] : memref<2x16xf32, #tpu.memory_space<smem>>
    %192 = vector.broadcast %191 : f32 to vector<8x128xf32>
    %193 = arith.mulf %192, %51 : vector<8x128xf32>
    %194 = arith.addf %190, %193 : vector<8x128xf32>
    %c9_68 = arith.constant 9 : index
    %195 = memref.load %arg3[%c9_68] : memref<16xf32, #tpu.memory_space<smem>>
    %196 = vector.broadcast %195 : f32 to vector<8x128xf32>
    %197 = arith.addf %194, %196 : vector<8x128xf32>
    %c9_69 = arith.constant 9 : index
    %198 = memref.load %arg4[%c9_69] : memref<16xf32, #tpu.memory_space<smem>>
    %199 = math.tanh %197 : vector<8x128xf32>
    %200 = vector.broadcast %198 : f32 to vector<8x128xf32>
    %201 = arith.mulf %200, %199 : vector<8x128xf32>
    %202 = arith.addf %187, %201 : vector<8x128xf32>
    %c0_70 = arith.constant 0 : index
    %c10 = arith.constant 10 : index
    %203 = memref.load %arg2[%c0_70, %c10] : memref<2x16xf32, #tpu.memory_space<smem>>
    %204 = vector.broadcast %203 : f32 to vector<8x128xf32>
    %205 = arith.mulf %204, %7 : vector<8x128xf32>
    %c1_71 = arith.constant 1 : index
    %c10_72 = arith.constant 10 : index
    %206 = memref.load %arg2[%c1_71, %c10_72] : memref<2x16xf32, #tpu.memory_space<smem>>
    %207 = vector.broadcast %206 : f32 to vector<8x128xf32>
    %208 = arith.mulf %207, %51 : vector<8x128xf32>
    %209 = arith.addf %205, %208 : vector<8x128xf32>
    %c10_73 = arith.constant 10 : index
    %210 = memref.load %arg3[%c10_73] : memref<16xf32, #tpu.memory_space<smem>>
    %211 = vector.broadcast %210 : f32 to vector<8x128xf32>
    %212 = arith.addf %209, %211 : vector<8x128xf32>
    %c10_74 = arith.constant 10 : index
    %213 = memref.load %arg4[%c10_74] : memref<16xf32, #tpu.memory_space<smem>>
    %214 = math.tanh %212 : vector<8x128xf32>
    %215 = vector.broadcast %213 : f32 to vector<8x128xf32>
    %216 = arith.mulf %215, %214 : vector<8x128xf32>
    %217 = arith.addf %202, %216 : vector<8x128xf32>
    %c0_75 = arith.constant 0 : index
    %c11 = arith.constant 11 : index
    %218 = memref.load %arg2[%c0_75, %c11] : memref<2x16xf32, #tpu.memory_space<smem>>
    %219 = vector.broadcast %218 : f32 to vector<8x128xf32>
    %220 = arith.mulf %219, %7 : vector<8x128xf32>
    %c1_76 = arith.constant 1 : index
    %c11_77 = arith.constant 11 : index
    %221 = memref.load %arg2[%c1_76, %c11_77] : memref<2x16xf32, #tpu.memory_space<smem>>
    %222 = vector.broadcast %221 : f32 to vector<8x128xf32>
    %223 = arith.mulf %222, %51 : vector<8x128xf32>
    %224 = arith.addf %220, %223 : vector<8x128xf32>
    %c11_78 = arith.constant 11 : index
    %225 = memref.load %arg3[%c11_78] : memref<16xf32, #tpu.memory_space<smem>>
    %226 = vector.broadcast %225 : f32 to vector<8x128xf32>
    %227 = arith.addf %224, %226 : vector<8x128xf32>
    %c11_79 = arith.constant 11 : index
    %228 = memref.load %arg4[%c11_79] : memref<16xf32, #tpu.memory_space<smem>>
    %229 = math.tanh %227 : vector<8x128xf32>
    %230 = vector.broadcast %228 : f32 to vector<8x128xf32>
    %231 = arith.mulf %230, %229 : vector<8x128xf32>
    %232 = arith.addf %217, %231 : vector<8x128xf32>
    %c0_80 = arith.constant 0 : index
    %c12 = arith.constant 12 : index
    %233 = memref.load %arg2[%c0_80, %c12] : memref<2x16xf32, #tpu.memory_space<smem>>
    %234 = vector.broadcast %233 : f32 to vector<8x128xf32>
    %235 = arith.mulf %234, %7 : vector<8x128xf32>
    %c1_81 = arith.constant 1 : index
    %c12_82 = arith.constant 12 : index
    %236 = memref.load %arg2[%c1_81, %c12_82] : memref<2x16xf32, #tpu.memory_space<smem>>
    %237 = vector.broadcast %236 : f32 to vector<8x128xf32>
    %238 = arith.mulf %237, %51 : vector<8x128xf32>
    %239 = arith.addf %235, %238 : vector<8x128xf32>
    %c12_83 = arith.constant 12 : index
    %240 = memref.load %arg3[%c12_83] : memref<16xf32, #tpu.memory_space<smem>>
    %241 = vector.broadcast %240 : f32 to vector<8x128xf32>
    %242 = arith.addf %239, %241 : vector<8x128xf32>
    %c12_84 = arith.constant 12 : index
    %243 = memref.load %arg4[%c12_84] : memref<16xf32, #tpu.memory_space<smem>>
    %244 = math.tanh %242 : vector<8x128xf32>
    %245 = vector.broadcast %243 : f32 to vector<8x128xf32>
    %246 = arith.mulf %245, %244 : vector<8x128xf32>
    %247 = arith.addf %232, %246 : vector<8x128xf32>
    %c0_85 = arith.constant 0 : index
    %c13 = arith.constant 13 : index
    %248 = memref.load %arg2[%c0_85, %c13] : memref<2x16xf32, #tpu.memory_space<smem>>
    %249 = vector.broadcast %248 : f32 to vector<8x128xf32>
    %250 = arith.mulf %249, %7 : vector<8x128xf32>
    %c1_86 = arith.constant 1 : index
    %c13_87 = arith.constant 13 : index
    %251 = memref.load %arg2[%c1_86, %c13_87] : memref<2x16xf32, #tpu.memory_space<smem>>
    %252 = vector.broadcast %251 : f32 to vector<8x128xf32>
    %253 = arith.mulf %252, %51 : vector<8x128xf32>
    %254 = arith.addf %250, %253 : vector<8x128xf32>
    %c13_88 = arith.constant 13 : index
    %255 = memref.load %arg3[%c13_88] : memref<16xf32, #tpu.memory_space<smem>>
    %256 = vector.broadcast %255 : f32 to vector<8x128xf32>
    %257 = arith.addf %254, %256 : vector<8x128xf32>
    %c13_89 = arith.constant 13 : index
    %258 = memref.load %arg4[%c13_89] : memref<16xf32, #tpu.memory_space<smem>>
    %259 = math.tanh %257 : vector<8x128xf32>
    %260 = vector.broadcast %258 : f32 to vector<8x128xf32>
    %261 = arith.mulf %260, %259 : vector<8x128xf32>
    %262 = arith.addf %247, %261 : vector<8x128xf32>
    %c0_90 = arith.constant 0 : index
    %c14 = arith.constant 14 : index
    %263 = memref.load %arg2[%c0_90, %c14] : memref<2x16xf32, #tpu.memory_space<smem>>
    %264 = vector.broadcast %263 : f32 to vector<8x128xf32>
    %265 = arith.mulf %264, %7 : vector<8x128xf32>
    %c1_91 = arith.constant 1 : index
    %c14_92 = arith.constant 14 : index
    %266 = memref.load %arg2[%c1_91, %c14_92] : memref<2x16xf32, #tpu.memory_space<smem>>
    %267 = vector.broadcast %266 : f32 to vector<8x128xf32>
    %268 = arith.mulf %267, %51 : vector<8x128xf32>
    %269 = arith.addf %265, %268 : vector<8x128xf32>
    %c14_93 = arith.constant 14 : index
    %270 = memref.load %arg3[%c14_93] : memref<16xf32, #tpu.memory_space<smem>>
    %271 = vector.broadcast %270 : f32 to vector<8x128xf32>
    %272 = arith.addf %269, %271 : vector<8x128xf32>
    %c14_94 = arith.constant 14 : index
    %273 = memref.load %arg4[%c14_94] : memref<16xf32, #tpu.memory_space<smem>>
    %274 = math.tanh %272 : vector<8x128xf32>
    %275 = vector.broadcast %273 : f32 to vector<8x128xf32>
    %276 = arith.mulf %275, %274 : vector<8x128xf32>
    %277 = arith.addf %262, %276 : vector<8x128xf32>
    %c0_95 = arith.constant 0 : index
    %c15 = arith.constant 15 : index
    %278 = memref.load %arg2[%c0_95, %c15] : memref<2x16xf32, #tpu.memory_space<smem>>
    %279 = vector.broadcast %278 : f32 to vector<8x128xf32>
    %280 = arith.mulf %279, %7 : vector<8x128xf32>
    %c1_96 = arith.constant 1 : index
    %c15_97 = arith.constant 15 : index
    %281 = memref.load %arg2[%c1_96, %c15_97] : memref<2x16xf32, #tpu.memory_space<smem>>
    %282 = vector.broadcast %281 : f32 to vector<8x128xf32>
    %283 = arith.mulf %282, %51 : vector<8x128xf32>
    %284 = arith.addf %280, %283 : vector<8x128xf32>
    %c15_98 = arith.constant 15 : index
    %285 = memref.load %arg3[%c15_98] : memref<16xf32, #tpu.memory_space<smem>>
    %286 = vector.broadcast %285 : f32 to vector<8x128xf32>
    %287 = arith.addf %284, %286 : vector<8x128xf32>
    %c15_99 = arith.constant 15 : index
    %288 = memref.load %arg4[%c15_99] : memref<16xf32, #tpu.memory_space<smem>>
    %289 = math.tanh %287 : vector<8x128xf32>
    %290 = vector.broadcast %288 : f32 to vector<8x128xf32>
    %291 = arith.mulf %290, %289 : vector<8x128xf32>
    %292 = arith.addf %277, %291 : vector<8x128xf32>
    %c0_100 = arith.constant 0 : index
    %293 = memref.load %arg5[%c0_100] : memref<1xf32, #tpu.memory_space<smem>>
    %294 = vector.broadcast %293 : f32 to vector<8x128xf32>
    %295 = arith.addf %292, %294 : vector<8x128xf32>
    %296 = arith.negf %295 : vector<8x128xf32>
    %297 = math.exp %296 : vector<8x128xf32>
    %cst_101 = arith.constant 1.000000e+00 : f32
    %298 = vector.broadcast %cst_101 : f32 to vector<8x128xf32>
    %299 = arith.addf %298, %297 : vector<8x128xf32>
    %300 = arith.divf %298, %299 : vector<8x128xf32>
    %c0_102 = arith.constant 0 : index
    %c0_103 = arith.constant 0 : index
    %301 = vector.load %arg6[%c0_102, %c0_103] : memref<8x128xf32, #tpu.memory_space<vmem>>, vector<8x128xf32>
    tpu.vector_store %arg6[%c0_102, %c0_103], %300 {strides = array<i32>} : memref<8x128xf32, #tpu.memory_space<vmem>>, vector<8x128xf32>,
    return
  }
  func.func @transform_0(%arg0: i32) -> (i32, i32, i32) {
    %c0_i32 = arith.constant 0 : i32
    %c0_i32_0 = arith.constant 0 : i32
    %c0_i32_1 = arith.constant 0 : i32
    return %c0_i32, %arg0, %c0_i32_0 : i32, i32, i32
  }
  func.func @transform_1(%arg0: i32) -> (i32, i32) {
    %c0_i32 = arith.constant 0 : i32
    %c0_i32_0 = arith.constant 0 : i32
    %c0_i32_1 = arith.constant 0 : i32
    return %c0_i32, %c0_i32_0 : i32, i32
  }
  func.func @transform_2(%arg0: i32) -> i32 {
    %c0_i32 = arith.constant 0 : i32
    %c0_i32_0 = arith.constant 0 : i32
    return %c0_i32 : i32
  }
  func.func @transform_3(%arg0: i32) -> i32 {
    %c0_i32 = arith.constant 0 : i32
    %c0_i32_0 = arith.constant 0 : i32
    return %c0_i32 : i32
  }
  func.func @transform_4(%arg0: i32) -> i32 {
    %c0_i32 = arith.constant 0 : i32
    %c0_i32_0 = arith.constant 0 : i32
    return %c0_i32 : i32
  }
  func.func @transform_5(%arg0: i32) -> (i32, i32) {
    %c0_i32 = arith.constant 0 : i32
    %c0_i32_0 = arith.constant 0 : i32
    return %arg0, %c0_i32 : i32, i32
  }
}

</mosaic_0001>

<bundles_post_ra>
// kernel: tpu_custom_call.1
= control target key start
LH: loop header
LB: loop body
LE: loop exit
PB: predicated region body
PF: predicated region fallthrough
CT: control target
= control target key end

     0   :  { %11 = vsyncpa [#allocation4], 0  ;;  %s949_s0 = inlined_call_operand.hbm [shape: f32[2,8,128], index: 0, kind: input, shape index: {}]   ;;  %s950_s1 = inlined_call_operand.vmem [shape: f32[2,16], index: 1, kind: input, shape index: {}]   ;;  %s951_s2 = inlined_call_operand.vmem [shape: f32[16], index: 2, kind: input, shape index: {}]   ;;  %s952_s3 = inlined_call_operand.vmem [shape: f32[16], index: 3, kind: input, shape index: {}]   ;;  %s953_s4 = inlined_call_operand.<no memory space> [shape: f32[1], index: 4, kind: input, shape index: {}]   ;;  %s954_s5 = inlined_call_operand.hbm [shape: f32[8,128], index: 5, kind: output, shape index: {}]  }
   0x1   :  { %12 = vsyncpa [#allocation6], 0 }
   0x2   :  { %13 = vsyncpa [#allocation9], 0  ;;  %s43_s20 = sshll.u32 %s951_s2, 4  ;;  %s44_s20 = int_to_ptr.vmem [resolvable:$true] %s43_s20 }
   0x3   :  { %14 = vsyncpa [#allocation5], 0  ;;  %s491_s21 = scalar_lea.vmem %s44_s20, 16  ;;  %p496_p1 = scmp.lt.s32.totalorder %s44_s20, %s44_s20 }
   0x4   :  { %p492_p0 = scmp.ne.s32.totalorder %s44_s20, %s491_s21  ;;  %p497_p2 = scmp.lt.s32.totalorder %s491_s21, %s491_s21 }
   0x6   :  { %p498_p3 = por %p497_p2, %p496_p1 }
   0x8   :  { %p499_p4 = pnand %p498_p3, %p492_p0 }
   0xa   :  { %502 = shalt.err (!%p499_p4)
}
   0xb   :  { %s579_s22 = smov [#allocation8]   ;;  %s580_s23 = smov [#allocation3]  }
   0xc   :  { %46 = dma.vmem_to_smem %s44_s20, 16, %s579_s22, [#allocation9]  }
   0xd   :  { %s20_s24 = sshll.u32 %s580_s23, 4  ;;  %s503_s27 = scalar_lea.hbm %s949_s0, 256  ;;  %s21_s24 = int_to_ptr.vmem [resolvable:$true] %s20_s24 }
   0xe   :  { %p504_p5 = scmp.ne.s32.totalorder %s949_s0, %s503_s27  ;;  %p507_p6 = scmp.lt.u32.totalorder %s503_s27, %s949_s0 }
  0x10   :  { %p509_p7 = pnand %p507_p6, %p504_p5 }
  0x12   :  { %512 = shalt.err (!%p509_p7)
}
  0x13   :  { %s513_s6 = scalar_lea.vmem %s21_s24, 256  ;;  %p518_p9 = scmp.lt.s32.totalorder %s21_s24, %s21_s24 }
  0x14   :  { %p514_p8 = scmp.ne.s32.totalorder %s21_s24, %s513_s6  ;;  %p519_p10 = scmp.lt.s32.totalorder %s513_s6, %s513_s6 }
  0x16   :  { %p520_p11 = por %p519_p10, %p518_p9 }
  0x18   :  { %p521_p12 = pnand %p520_p11, %p514_p8 }
  0x1a   :  { %524 = shalt.err (!%p521_p12)
}
  0x1b   :  { %s581_s7 = smov 128   ;;  %s582_s8 = smov 8  }
  0x1c   :  { %26 = dma.hbm_to_vmem [thread:$0]  %s949_s0, 256, %s21_s24, [#allocation4], %s581_s7, %s581_s7, %s582_s8  }
  0x1d   :  { %s33_s13 = sshll.u32 %s950_s1, 4  ;;  %s53_s16 = sshll.u32 %s952_s3, 4  ;;  %s34_s13 = int_to_ptr.vmem [resolvable:$true] %s33_s13  ;;  %s54_s16 = int_to_ptr.vmem [resolvable:$true] %s53_s16 }
  0x1e   :  { %s525_s17 = scalar_lea.vmem %s34_s13, 32  ;;  %p530_p0 = scmp.lt.s32.totalorder %s34_s13, %s34_s13 }
  0x1f   :  { %p526_p13 = scmp.ne.s32.totalorder %s34_s13, %s525_s17  ;;  %p531_p1 = scmp.lt.s32.totalorder %s525_s17, %s525_s17 }
  0x21   :  { %p532_p2 = por %p531_p1, %p530_p0 }
  0x23   :  { %p533_p3 = pnand %p532_p2, %p526_p13 }
  0x25   :  { %536 = shalt.err (!%p533_p3)
}
  0x26   :  { %s583_s18 = smov [#allocation7]   ;;  %s537_s0 = scalar_lea.vmem %s54_s16, 16 }
  0x27   :  { %36 = dma.vmem_to_smem %s34_s13, 32, %s583_s18, [#allocation6]  }
  0x28   :  { %p538_p4 = scmp.ne.s32.totalorder %s54_s16, %s537_s0  ;;  %p542_p5 = scmp.lt.s32.totalorder %s54_s16, %s54_s16 }
  0x29   :  { %p543_p6 = scmp.lt.s32.totalorder %s537_s0, %s537_s0 }
  0x2b   :  { %p544_p7 = por %p543_p6, %p542_p5 }
  0x2d   :  { %p545_p8 = pnand %p544_p7, %p538_p4 }
  0x2f   :  { %548 = shalt.err (!%p545_p8)
}
  0x30   :  { %s584_s1 = smov [#allocation10]  }
  0x31   :  { %56 = dma.vmem_to_smem %s54_s16, 16, %s584_s1, [#allocation9]  }
  0x32   :  { %571 = dma.done.wait [#allocation4], 256  }
  0x33   :  { %572 = vsyncadd [#allocation4], 4294967040 }
  0x34   :  { %573 = dma.done.wait [#allocation6], 32  }
  0x35   :  { %574 = vsyncadd [#allocation6], 4294967264 }
  0x36   :  { %575 = dma.done.wait [#allocation9], 32  }
  0x37   :  { %576 = vsyncadd [#allocation9], 4294967264 }
  0x38   :  { %71 = sfence }
  0x39   :  { %v637_v0 = vld [vmem:[#allocation3] sm:$0xff]  ;;  %v639_v1 = vld [vmem:[#allocation3 + $0x8] sm:$0xff]  ;;  %s672_s3 = sld [smem:[#allocation7]]  ;;  %s680_s22 = sld [smem:[#allocation7 + $0x1]] }
  0x3a   :  { %v642_v2 = vand.u32 2147483647, %v639_v1  ;;  %v645_v3 = vand.u32 2147483647, %v637_v0  ;;  %v75_v8 = vmul.f32 %v637_v0, %v637_v0  ;;  %v76_v9 = vmul.f32 %v639_v1, %v639_v1  ;;  %s674_s19 = sld [smem:[#allocation7 + $0x80]]  ;;  %s682_s23 = sld [smem:[#allocation7 + $0x81]] }
  0x3b   :  { %s676_s20 = sld [smem:[#allocation8]]  ;;  %s684_s24 = sld [smem:[#allocation8 + $0x1]]  ;;  %vm109_vm4 = vcmp.lt.f32.partialorder %v637_v0, 0.0  ;;  %vm112_vm5 = vcmp.lt.f32.partialorder %v639_v1, 0.0 }
  0x3c   :  { %vm87_vm0 = vcmp.gt.f32.partialorder %v642_v2, %v645_v3  ;;  %v669_v12 = vadd.f32 %v76_v9, %v75_v8  ;;  %s678_s21 = sld [smem:[#allocation10]]  ;;  %s686_s25 = sld [smem:[#allocation10 + $0x1]] }
  0x3d   :  { %v654_v4 = vsel %vm87_vm0, %v642_v2, %v645_v3  ;;  %v88_v6 = vsel %vm87_vm0, %v645_v3, %v642_v2  ;;  %s688_s26 = sld [smem:[#allocation7 + $0x2]]  ;;  %s696_s29 = sld [smem:[#allocation7 + $0x3]] }
  0x3e   :  { %vm90_vm1 = vcmp.eq.f32.partialorder %v654_v4, 0.0  ;;  %s690_s27 = sld [smem:[#allocation7 + $0x82]]  ;;  %s698_s30 = sld [smem:[#allocation7 + $0x83]]  ;;  %vm80_vm2 = vcmp.eq.f32.partialorder %v669_v12, inf  ;;  %vm82_vm3 = vcmp.eq.f32.partialorder %v669_v12, 0.0  ;;  %v83_v25 = vand.u32 2147483648, %v669_v12 }
  0x3f   :  { %v91_v5 = vsel %vm90_vm1, 1.0, %v654_v4  ;;  %s692_s28 = sld [smem:[#allocation8 + $0x2]]  ;;  %s700_s6 = sld [smem:[#allocation8 + $0x3]]  ;;  %v116_v26 = vstv %s672_s3  ;;  %v131_v31 = vstv %s680_s22 }
  0x40   :  { %451 = vrcp.f32 %v91_v5  ;;  %s694_s2 = sld [smem:[#allocation10 + $0x2]]  ;;  %s702_s7 = sld [smem:[#allocation10 + $0x3]]  ;;  %v119_v27 = vstv %s674_s19  ;;  %v134_v32 = vstv %s682_s23 }
  0x41   :  { %453 = vrsqrt.f32 %v669_v12  ;;  %s704_s8 = sld [smem:[#allocation7 + $0x4]]  ;;  %s710_s11 = sld [smem:[#allocation7 + $0x5]]  ;;  %v123_v28 = vstv %s676_s20  ;;  %v138_v34 = vstv %s684_s24 }
  0x42   :  { %s706_s9 = sld [smem:[#allocation7 + $0x84]]  ;;  %s716_s12 = sld [smem:[#allocation7 + $0x85]]  ;;  %v127_v30 = vstv %s678_s21  ;;  %v142_v35 = vstv %s686_s25 }
  0x43   :  { %s708_s10 = sld [smem:[#allocation8 + $0x4]]  ;;  %s718_s13 = sld [smem:[#allocation8 + $0x5]]  ;;  %v146_v36 = vstv %s688_s26  ;;  %v161_v41 = vstv %s696_s29 }
  0x44   :  { %s720_s14 = sld [smem:[#allocation7 + $0x6]]  ;;  %s728_s16 = sld [smem:[#allocation7 + $0x7]]  ;;  %v149_v38 = vstv %s690_s27  ;;  %v164_v42 = vstv %s698_s30 }
  0x45   :  { %s722_s15 = sld [smem:[#allocation7 + $0x86]]  ;;  %s734_s17 = sld [smem:[#allocation7 + $0x8]]  ;;  %v153_v39 = vstv %s692_s28  ;;  %v168_v43 = vstv %s700_s6 }
  0x46   :  { %s742_s18 = sld [smem:[#allocation8 + $0x6]]  ;;  %s744_s0 = sld [smem:[#allocation7 + $0x87]]  ;;  %v157_v40 = vstv %s694_s2  ;;  %v172_v44 = vstv %s702_s7 }
  0x47   :  { %s749_s1 = sld [smem:[#allocation8 + $0x7]]  ;;  %s751_s3 = sld [smem:[#allocation7 + $0x88]]  ;;  %v176_v47 = vstv %s704_s8  ;;  %v191_v51 = vstv %s710_s11 }
  0x48   :  { %s757_s22 = sld [smem:[#allocation8 + $0x8]]  ;;  %s759_s23 = sld [smem:[#allocation7 + $0x9]]  ;;  %v179_v48 = vstv %s706_s9  ;;  %v194_v52 = vstv %s716_s12 }
  0x49   :  { %v183_v50 = vstv %s708_s10  ;;  %s775_s26 = sld [smem:[#allocation7 + $0xa]]  ;;  %v198_v54 = vstv %s718_s13  ;;  %s784_s27 = sld [smem:[#allocation7 + $0x89]] }
  0x4a   :  { %v452_v7 = vpop.eup %451  ;;  %v206_v55 = vstv %s720_s14  ;;  %v221_v60 = vstv %s728_s16  ;;  %s794_s29 = sld [smem:[#allocation7 + $0x8a]]  ;;  %s800_s30 = sld [smem:[#allocation7 + $0xb]] }
  0x4b   :  { %v93_v10 = vmul.f32 %v452_v7, %v88_v6  ;;  %v454_v20 = vpop.eup %453  ;;  %v209_v56 = vstv %s722_s15  ;;  %v236_v2 = vstv %s734_s17  ;;  %s809_s8 = sld [smem:[#allocation7 + $0x8b]]  ;;  %s817_s9 = sld [smem:[#allocation7 + $0xc]] }
  0x4c   :  { %v79_v23 = vmul.f32 %v454_v20, %v669_v12  ;;  %v213_v6 = vstv %s742_s18  ;;  %v224_v0 = vstv %s744_s0  ;;  %s819_s11 = sld [smem:[#allocation7 + $0x8c]]  ;;  %s825_s19 = sld [smem:[#allocation7 + $0xd]] }
  0x4d   :  { %v94_v11 = vmul.f32 %v93_v10, %v93_v10  ;;  %v228_v8 = vstv %s749_s1  ;;  %v239_v9 = vstv %s751_s3  ;;  %s827_s12 = sld [smem:[#allocation7 + $0x8d]]  ;;  %s837_s14 = sld [smem:[#allocation10 + $0x4]] }
  0x4e   :  { %v81_v33 = vsel %vm80_vm2, %v669_v12, %v79_v23  ;;  %v243_v12 = vstv %s757_s22  ;;  %s840_s15 = sld [smem:[#allocation8 + $0x9]]  ;;  %s846_s20 = sld [smem:[#allocation7 + $0xe]] }
  0x4f   :  { %v95_v13 = vmul.f32 -0.0117212, %v94_v11  ;;  %v763_v45 = vsel %vm82_vm3, %v83_v25, %v81_v33  ;;  %v266_v20 = vstv %s775_s26  ;;  %s851_s24 = sld [smem:[#allocation8 + $0xa]]  ;;  %s854_s28 = sld [smem:[#allocation7 + $0x8e]] }
  0x50   :  { %v117_v57 = vmul.f32 %v116_v26, %v763_v45  ;;  %v132_v58 = vmul.f32 %v131_v31, %v763_v45  ;;  %v147_v59 = vmul.f32 %v146_v36, %v763_v45  ;;  %v162_v62 = vmul.f32 %v161_v41, %v763_v45  ;;  %s859_s6 = sld [smem:[#allocation7 + $0xf]]  ;;  %s862_s10 = sld [smem:[#allocation8 + $0xb]] }
  0x51   :  { %v96_v14 = vadd.f32 0.05265332, %v95_v13  ;;  %v177_v63 = vmul.f32 %v176_v47, %v763_v45  ;;  %v192_v4 = vmul.f32 %v191_v51, %v763_v45  ;;  %v207_v5 = vmul.f32 %v206_v55, %v763_v45  ;;  %s866_s16 = sld [smem:[#allocation7 + $0x8f]]  ;;  %s870_s13 = sld [smem:[#allocation8 + $0xc]] }
  0x52   :  { %v222_v7 = vmul.f32 %v221_v60, %v763_v45  ;;  %v251_v13 = vstv %s759_s23  ;;  %v267_v41 = vmul.f32 %v266_v20, %v763_v45  ;;  %v311_v55 = vstv %s825_s19  ;;  %s881_s17 = sld [smem:[#allocation8 + $0xd]]  ;;  %s892_s0 = sld [smem:[#allocation8 + $0xe]] }
  0x53   :  { %v97_v15 = vmul.f32 %v96_v14, %v94_v11  ;;  %v252_v36 = vmul.f32 %v251_v13, %v763_v45  ;;  %v187_v60 = vstv %s837_s14  ;;  %s883_s18 = sld [smem:[#allocation10 + $0x5]]  ;;  %s894_s1 = sld [smem:[#allocation10 + $0x6]] }
  0x54   :  { %s900_s3 = sld [smem:[#allocation8 + $0xf]]  ;;  %s913_s21 = sld [smem:[#allocation10 + $0x8]] }
  0x55   :  { %v98_v16 = vadd.f32 -0.11643287, %v97_v15  ;;  %s904_s22 = sld [smem:[#allocation10 + $0x7]]  ;;  %s920_s25 = sld [smem:[#allocation10 + $0x9]] }
  0x56   :  { %v288_v13 = vstv %s862_s10  ;;  %s924_s2 = sld [smem:[#allocation10 + $0xa]]  ;;  %s928_s7 = sld [smem:[#allocation10 + $0xb]] }
  0x57   :  { %v99_v17 = vmul.f32 %v98_v16, %v94_v11  ;;  %s430_s23 = sld [smem:[#allocation10 + $0xc]]  ;;  %s434_s26 = sld [smem:[#allocation10 + $0xd]] }
  0x59   :  { %v100_v18 = vadd.f32 0.19354346, %v99_v17 }
  0x5b   :  { %v101_v19 = vmul.f32 %v100_v18, %v94_v11 }
  0x5d   :  { %v102_v21 = vadd.f32 -0.33262348, %v101_v19 }
  0x5f   :  { %v103_v22 = vmul.f32 %v102_v21, %v94_v11  ;;  %v237_v11 = vmul.f32 %v236_v2, %v763_v45 }
  0x61   :  { %v104_v24 = vadd.f32 0.99997723, %v103_v22 }
  0x63   :  { %v105_v29 = vmul.f32 %v104_v24, %v93_v10 }
  0x65   :  { %v106_v37 = vsub.f32 1.5707964, %v105_v29 }
  0x67   :  { %v107_v46 = vsel %vm87_vm0, %v106_v37, %v105_v29  ;;  %v254_v29 = vstv %s784_s27  ;;  %s438_s27 = sld [smem:[#allocation10 + $0xe]] }
  0x68   :  { %v108_v49 = vsel %vm90_vm1, 0.0, %v107_v46 }
  0x69   :  { %v110_v53 = vsub.f32 3.1415927, %v108_v49 }
  0x6b   :  { %v111_v61 = vsel %vm109_vm4, %v110_v53, %v108_v49  ;;  %v296_v49 = vstv %s817_s9  ;;  %s585_s9 = smov [#allocation11]  }
  0x6c   :  { %v113_v3 = vsub.f32 0.0, %v111_v61 }
  0x6e   :  { %v804_v10 = vsel %vm112_vm5, %v113_v3, %v111_v61  ;;  %v258_v61 = vstv %s840_s15 }
  0x6f   :  { %v120_v14 = vmul.f32 %v119_v27, %v804_v10  ;;  %v135_v15 = vmul.f32 %v134_v32, %v804_v10  ;;  %v150_v16 = vmul.f32 %v149_v38, %v804_v10  ;;  %v165_v17 = vmul.f32 %v164_v42, %v804_v10 }
  0x70   :  { %v180_v1 = vmul.f32 %v179_v48, %v804_v10  ;;  %v195_v18 = vmul.f32 %v194_v52, %v804_v10  ;;  %v210_v19 = vmul.f32 %v209_v56, %v804_v10  ;;  %v225_v27 = vmul.f32 %v224_v0, %v804_v10 }
  0x71   :  { %v121_v21 = vadd.f32 %v120_v14, %v117_v57  ;;  %v136_v22 = vadd.f32 %v135_v15, %v132_v58  ;;  %v151_v23 = vadd.f32 %v150_v16, %v147_v59  ;;  %v166_v24 = vadd.f32 %v165_v17, %v162_v62 }
  0x72   :  { %v181_v25 = vadd.f32 %v180_v1, %v177_v63  ;;  %v196_v26 = vadd.f32 %v195_v18, %v192_v4  ;;  %v211_v38 = vadd.f32 %v210_v19, %v207_v5  ;;  %v269_v42 = vstv %s794_s29  ;;  %s442_s29 = sld [smem:[#allocation10 + $0xf]] }
  0x73   :  { %v124_v31 = vadd.f32 %v123_v28, %v121_v21  ;;  %v139_v32 = vadd.f32 %v138_v34, %v136_v22  ;;  %v154_v33 = vadd.f32 %v153_v39, %v151_v23  ;;  %v169_v37 = vadd.f32 %v168_v43, %v166_v24 }
  0x74   :  { %v184_v28 = vadd.f32 %v183_v50, %v181_v25  ;;  %v240_v34 = vmul.f32 %v239_v9, %v804_v10  ;;  %v281_v39 = vstv %s800_s30  ;;  %v199_v43 = vadd.f32 %v198_v54, %v196_v26 }
  0x75   :  { %455 = vtanh.f32 %v124_v31  ;;  %v226_v46 = vadd.f32 %v225_v27, %v222_v7  ;;  %v255_v47 = vmul.f32 %v254_v29, %v804_v10  ;;  %v284_v48 = vstv %s809_s8 }
  0x76   :  { %457 = vtanh.f32 %v139_v32  ;;  %v299_v50 = vstv %s819_s11  ;;  %v214_v51 = vadd.f32 %v213_v6, %v211_v38  ;;  %v241_v52 = vadd.f32 %v240_v34, %v237_v11  ;;  %s371_s11 = sshll.u32 %s585_s9, 4  ;;  %s372_s11 = int_to_ptr.vmem [resolvable:$true] %s371_s11 }
  0x77   :  { %459 = vtanh.f32 %v154_v33  ;;  %v270_v53 = vmul.f32 %v269_v42, %v804_v10  ;;  %v282_v54 = vmul.f32 %v281_v39, %v763_v45  ;;  %v314_v56 = vstv %s827_s12  ;;  %s549_s19 = scalar_lea.vmem %s372_s11, 128  ;;  %p554_p10 = scmp.lt.s32.totalorder %s372_s11, %s372_s11 }
  0x78   :  { %461 = vtanh.f32 %v169_v37  ;;  %v229_v57 = vadd.f32 %v228_v8, %v226_v46  ;;  %v256_v58 = vadd.f32 %v255_v47, %v252_v36  ;;  %v285_v59 = vmul.f32 %v284_v48, %v804_v10  ;;  %p550_p9 = scmp.ne.s32.totalorder %s372_s11, %s549_s19  ;;  %p555_p11 = scmp.lt.s32.totalorder %s549_s19, %s549_s19 }
  0x79   :  { %463 = vtanh.f32 %v184_v28  ;;  %v297_v62 = vmul.f32 %v296_v49, %v763_v45  ;;  %v300_v63 = vmul.f32 %v299_v50, %v804_v10  ;;  %v244_v2 = vadd.f32 %v243_v12, %v241_v52 }
  0x7a   :  { %465 = vtanh.f32 %v199_v43  ;;  %v271_v3 = vadd.f32 %v270_v53, %v267_v41  ;;  %v326_v4 = vstv %s846_s20  ;;  %v273_v5 = vstv %s851_s24  ;;  %p556_p12 = por %p555_p11, %p554_p10 }
  0x7b   :  { %467 = vtanh.f32 %v214_v51  ;;  %v312_v6 = vmul.f32 %v311_v55, %v763_v45  ;;  %v315_v7 = vmul.f32 %v314_v56, %v804_v10  ;;  %v329_v0 = vstv %s854_s28 }
  0x7c   :  { %469 = vtanh.f32 %v229_v57  ;;  %v259_v8 = vadd.f32 %v258_v61, %v256_v58  ;;  %v286_v9 = vadd.f32 %v285_v59, %v282_v54  ;;  %v341_v11 = vstv %s859_s6  ;;  %p557_p13 = pnand %p556_p12, %p550_p9 }
  0x7d   :  { %v301_v14 = vadd.f32 %v300_v63, %v297_v62  ;;  %v327_v15 = vmul.f32 %v326_v4, %v763_v45  ;;  %v344_v16 = vstv %s866_s16  ;;  %471 = vtanh.f32 %v244_v2 }
  0x7e   :  { %v274_v18 = vadd.f32 %v273_v5, %v271_v3  ;;  %v330_v19 = vmul.f32 %v329_v0, %v804_v10  ;;  %v303_v22 = vstv %s870_s13  ;;  %v316_v23 = vadd.f32 %v315_v7, %v312_v6 }
  0x7f   :  { %v456_v12 = vpop.eup %455  ;;  %v342_v24 = vmul.f32 %v341_v11, %v763_v45  ;;  %473 = vtanh.f32 %v259_v8  ;;  %v345_v27 = vmul.f32 %v344_v16, %v804_v10  ;;  %v202_v36 = vstv %s883_s18 }
  0x80   :  { %v458_v17 = vpop.eup %457  ;;  %v128_v1 = vmul.f32 %v456_v12, %v127_v30  ;;  %v289_v30 = vadd.f32 %v288_v13, %v286_v9  ;;  %475 = vtanh.f32 %v274_v18  ;;  %v331_v45 = vadd.f32 %v330_v19, %v327_v15 }
  0x81   :  { %v460_v20 = vpop.eup %459  ;;  %v143_v21 = vmul.f32 %v458_v17, %v142_v35  ;;  %v318_v35 = vstv %s881_s17  ;;  %v333_v41 = vstv %s892_s0  ;;  %v217_v28 = vstv %s894_s1 }
  0x82   :  { %v462_v25 = vpop.eup %461  ;;  %v158_v26 = vmul.f32 %v460_v20, %v157_v40  ;;  %v304_v40 = vadd.f32 %v303_v22, %v301_v14  ;;  %477 = vtanh.f32 %v289_v30  ;;  %v346_v10 = vadd.f32 %v345_v27, %v342_v24 }
  0x83   :  { %v464_v29 = vpop.eup %463  ;;  %v144_v31 = vadd.f32 %v143_v21, %v128_v1  ;;  %v173_v32 = vmul.f32 %v462_v25, %v172_v44  ;;  %v319_v44 = vadd.f32 %v318_v35, %v316_v23  ;;  %v348_v43 = vstv %s900_s3 }
  0x84   :  { %v466_v33 = vpop.eup %465  ;;  %v188_v38 = vmul.f32 %v464_v29, %v187_v60  ;;  %v232_v47 = vstv %s904_s22  ;;  %479 = vtanh.f32 %v304_v40  ;;  %v334_v48 = vadd.f32 %v333_v41, %v331_v45 }
  0x85   :  { %v159_v37 = vadd.f32 %v158_v26, %v144_v31  ;;  %v468_v42 = vpop.eup %467  ;;  %v203_v39 = vmul.f32 %v466_v33, %v202_v36  ;;  %v247_v52 = vstv %s913_s21  ;;  %481 = vtanh.f32 %v319_v44 }
  0x86   :  { %v470_v46 = vpop.eup %469  ;;  %v218_v50 = vmul.f32 %v468_v42, %v217_v28  ;;  %v349_v53 = vadd.f32 %v348_v43, %v346_v10  ;;  %v262_v57 = vstv %s920_s25  ;;  %483 = vtanh.f32 %v334_v48 }
  0x87   :  { %v174_v34 = vadd.f32 %v173_v32, %v159_v37  ;;  %v472_v51 = vpop.eup %471  ;;  %v233_v55 = vmul.f32 %v470_v46, %v232_v47  ;;  %v277_v61 = vstv %s924_s2  ;;  %v292_v3 = vstv %s928_s7 }
  0x88   :  { %v248_v59 = vmul.f32 %v472_v51, %v247_v52  ;;  %485 = vtanh.f32 %v349_v53  ;;  %v307_v7 = vstv %s430_s23  ;;  %v322_v11 = vstv %s434_s26 }
  0x89   :  { %v189_v49 = vadd.f32 %v188_v38, %v174_v34  ;;  %v474_v56 = vpop.eup %473  ;;  %v337_v15 = vstv %s438_s27  ;;  %v352_v18 = vstv %s442_s29  ;;  %v356_v24 = vstv %s953_s4 }
  0x8a   :  { %v476_v60 = vpop.eup %475  ;;  %v263_v63 = vmul.f32 %v474_v56, %v262_v57 }
  0x8b   :  { %v204_v54 = vadd.f32 %v203_v39, %v189_v49  ;;  %v278_v5 = vmul.f32 %v476_v60, %v277_v61 }
  0x8c   :  { %v478_v2 = vpop.eup %477 }
  0x8d   :  { %v219_v58 = vadd.f32 %v218_v50, %v204_v54  ;;  %v293_v8 = vmul.f32 %v478_v2, %v292_v3 }
  0x8e   :  { %v480_v6 = vpop.eup %479 }
  0x8f   :  { %v234_v62 = vadd.f32 %v233_v55, %v219_v58  ;;  %v482_v9 = vpop.eup %481  ;;  %v308_v13 = vmul.f32 %v480_v6, %v307_v7 }
  0x90   :  { %v484_v14 = vpop.eup %483  ;;  %v323_v17 = vmul.f32 %v482_v9, %v322_v11 }
  0x91   :  { %v249_v4 = vadd.f32 %v248_v59, %v234_v62  ;;  %v338_v20 = vmul.f32 %v484_v14, %v337_v15 }
  0x92   :  { %v486_v1 = vpop.eup %485 }
  0x93   :  { %v264_v0 = vadd.f32 %v263_v63, %v249_v4  ;;  %v353_v22 = vmul.f32 %v486_v1, %v352_v18 }
  0x95   :  { %v279_v12 = vadd.f32 %v278_v5, %v264_v0 }
  0x97   :  { %v294_v16 = vadd.f32 %v293_v8, %v279_v12 }
  0x99   :  { %v309_v19 = vadd.f32 %v308_v13, %v294_v16 }
  0x9b   :  { %v324_v21 = vadd.f32 %v323_v17, %v309_v19 }
  0x9d   :  { %v339_v23 = vadd.f32 %v338_v20, %v324_v21 }
  0x9f   :  { %v354_v25 = vadd.f32 %v353_v22, %v339_v23 }
  0xa1   :  { %v357_v26 = vadd.f32 %v356_v24, %v354_v25 }
  0xa3   :  { %v443_v30 = vmul.f32 -1.442695, %v357_v26 }
  0xa5   :  { %487 = vpow2.f32 %v443_v30 }
  0xaf   :  { %v488_v27 = vpop.eup %487 }
  0xb0   :  { %v361_v29 = vadd.f32 1.0, %v488_v27 }
  0xb2   :  { %489 = vrcp.f32 %v361_v29 }
  0xbc   :  { %v490_v31 = vpop.eup %489 }
  0xbd   :  { %364 = vst [vmem:[#allocation11] sm:$0xff] %v490_v31 }
  0xbe   :  { %560 = shalt.err (!%p557_p13)
}
  0xbf   :  { %s561_s14 = scalar_lea.hbm %s954_s5, 128 }
  0xc0   :  { %p562_p0 = scmp.ne.s32.totalorder %s954_s5, %s561_s14  ;;  %p565_p1 = scmp.lt.u32.totalorder %s561_s14, %s954_s5 }
  0xc2   :  { %p567_p2 = pnand %p565_p1, %p562_p0 }
  0xc4   :  { %570 = shalt.err (!%p567_p2)
}
  0xc5   :  { %374 = dma.vmem_to_hbm [thread:$0]  %s372_s11, 128, %s954_s5, [#allocation5]  }
  0xc6   :  { %577 = dma.done.wait [#allocation5], 128  }
  0xc7   :  { %578 = vsyncadd [#allocation5], 4294967168 }
  0xc8   :  { %378 = vsyncpa [#allocation4], 1 }
  0xc9   :  { %379 = vsyncpa [#allocation5], 1 }
  0xca   :  { %380 = vsyncpa [#allocation6], 1 }
  0xcb   :  { %381 = vsyncpa [#allocation9], 1 }

</bundles_post_ra>
